<compile_context>
chip_gen: v6e
topology: v6e:2x2x1
jax: 0.10.0
libtpu: 0.0.40
codegen_flags: <defaults>
</compile_context>

<pallas_src>
import jax
import jax.numpy as jnp
from jax.experimental import pallas as pl
from jax.experimental.pallas import tpu as pltpu


LANE = 128
SUBLANE = 16  # bf16 packs 16 rows per vreg


def _round_up(x, m):
    return (x + m - 1) // m * m


def _make_kernel(num_mid_layers):
    """Fused MLP kernel.

    Refs:
      x_ref  : (TB, Din)            bf16 padded input batch tile
      w0_ref : (Din, D)             bf16 layer-0 weight
      wm_ref : (L_mid, D, D)        bf16 hidden/trunk-output weight slab
      wh_ref : (D, Dh)              bf16 fused [mean | value] head weight
      bt_ref : (L_mid + 1, D)       f32 trunk biases
      bh_ref : (1, Dh)              f32 head bias
      o_ref  : (TB, Dh)             f32 fused head output [mean | value | 0]
    """

    def kernel(x_ref, w0_ref, wm_ref, wh_ref, bt_ref, bh_ref, o_ref):
        # Layer 0: Linear(in, hid) + ReLU  (bf16 MXU, f32 accumulate).
        y = jnp.dot(x_ref[...], w0_ref[...], preferred_element_type=jnp.float32)
        y = jnp.maximum(y + bt_ref[0], 0.0)
        # Hidden layers + trunk output layer (no activation on the last one).
        for l in range(num_mid_layers):
            y = (
                jnp.dot(
                    y.astype(jnp.bfloat16),
                    wm_ref[l],
                    preferred_element_type=jnp.float32,
                )
                + bt_ref[l + 1]
            )
            if l < num_mid_layers - 1:
                y = jnp.maximum(y, 0.0)
        # Fused actor-mean + critic-value head -> lane-dense (TB, 128) output.
        o_ref[...] = (
            jnp.dot(
                y.astype(jnp.bfloat16),
                wh_ref[...],
                preferred_element_type=jnp.float32,
            )
            + bh_ref[...]
        )

    return kernel


def pack_params(params, input_dim):
    """Zero-pad and stack all weights/biases into bf16/f32 VMEM slabs."""
    hidden_dim = params["w0"].shape[1]
    output_dim = params["w3"].shape[1]
    action_dim = params["wa"].shape[1]

    d_in_pad = _round_up(input_dim, LANE)
    d_pad = _round_up(max(hidden_dim, output_dim), LANE)
    d_head_pad = _round_up(action_dim + 1, LANE)

    # Layer-0 weight gets its own (Din, D) block.
    w0 = jnp.pad(
        params["w0"],
        ((0, d_in_pad - input_dim), (0, d_pad - hidden_dim)),
    ).astype(jnp.bfloat16)

    # Hidden layers 1..2 and trunk-output layer 3: uniform (D, D) blocks.
    mids = [params["w1"], params["w2"], params["w3"]]
    wm = jnp.stack(
        [
            jnp.pad(w, ((0, d_pad - w.shape[0]), (0, d_pad - w.shape[1])))
            for w in mids
        ]
    ).astype(jnp.bfloat16)  # (3, D, D)

    # Fused actor-mean + critic-value head: (D, 128) block.
    w_head = jnp.concatenate([params["wa"], params["wc"]], axis=1)
    wh = jnp.pad(
        w_head,
        ((0, d_pad - w_head.shape[0]), (0, d_head_pad - w_head.shape[1])),
    ).astype(jnp.bfloat16)

    # Dense 2-D bias slabs (kept in f32).
    b_trunk = jnp.stack(
        [
            jnp.pad(params[k][0], (0, d_pad - params[k].shape[1]))
            for k in ("b0", "b1", "b2", "b3")
        ]
    ).astype(jnp.float32)  # (4, D)
    b_head = jnp.pad(
        jnp.concatenate([params["ba"], params["bc"]], axis=1),
        ((0, 0), (0, d_head_pad - (action_dim + 1))),
    ).astype(jnp.float32)  # (1, 128)

    return w0, wm, wh, b_trunk, b_head, d_in_pad, d_pad, d_head_pad


def actor_critic_forward(x, params, actor_only=True, batch_tile=1024):
    """Run the fused Pallas kernel. `params` is the dict from init_params."""
    batch, input_dim = x.shape
    action_dim = params["wa"].shape[1]
    num_mid = 3  # 2 hidden Linears + the trunk output Linear

    w0, wm, wh, bt, bh, d_in_pad, d_pad, d_head_pad = pack_params(params, input_dim)

    # Batch padding / tiling: force >= 2 tiles whenever possible so the
    # "parallel" grid axis gives v7x's second TensorCore work.
    batch_p = _round_up(batch, SUBLANE)
    if batch_p >= 2 * SUBLANE:
        tb = min(batch_tile, _round_up((batch_p + 1) // 2, SUBLANE))
    else:
        tb = batch_p
    batch_p = _round_up(batch_p, tb)
    grid_b = batch_p // tb

    x_p = jnp.pad(
        x, ((0, batch_p - batch), (0, d_in_pad - input_dim))
    ).astype(jnp.bfloat16)

    kernel = _make_kernel(num_mid)

    flops = 2 * batch_p * (
        d_in_pad * d_pad + num_mid * d_pad * d_pad + d_pad * d_head_pad
    )
    bytes_accessed = (
        2 * (batch_p * d_in_pad + d_in_pad * d_pad + num_mid * d_pad * d_pad
             + d_pad * d_head_pad)
        + 4 * ((num_mid + 1) * d_pad + d_head_pad + batch_p * d_head_pad)
    )
    cost = pl.CostEstimate(
        flops=flops, transcendentals=0, bytes_accessed=bytes_accessed
    )

    resident = pl.Buffered(1)  # grid-invariant params: single VMEM buffer

    grid_spec = pltpu.PrefetchScalarGridSpec(
        num_scalar_prefetch=0,
        grid=(grid_b,),
        in_specs=[
            pl.BlockSpec((tb, d_in_pad), lambda i: (i, 0)),                   # x
            pl.BlockSpec((d_in_pad, d_pad), lambda i: (0, 0),
                         pipeline_mode=resident),                             # w0
            pl.BlockSpec((num_mid, d_pad, d_pad), lambda i: (0, 0, 0),
                         pipeline_mode=resident),                             # w1..3
            pl.BlockSpec((d_pad, d_head_pad), lambda i: (0, 0),
                         pipeline_mode=resident),                             # head W
            pl.BlockSpec((num_mid + 1, d_pad), lambda i: (0, 0),
                         pipeline_mode=resident),                             # trunk b
            pl.BlockSpec((1, d_head_pad), lambda i: (0, 0),
                         pipeline_mode=resident),                             # head b
        ],
        out_specs=pl.BlockSpec((tb, d_head_pad), lambda i: (i, 0)),
    )

    out = pl.pallas_call(
        kernel,
        out_shape=jax.ShapeDtypeStruct((batch_p, d_head_pad), jnp.float32),
        grid_spec=grid_spec,
        compiler_params=pltpu.CompilerParams(
            dimension_semantics=("parallel",),
            vmem_limit_bytes=64 * 1024 * 1024,
        ),
        cost_estimate=cost,
    )(x_p, w0, wm, wh, bt, bh)

    # Slice the fused, padded output back to logical widths.
    mean = out[:batch, :action_dim]
    values = out[:batch, action_dim:action_dim + 1]
    # action_std depends only on a parameter -> plain JAX (no kernel traffic).
    std = jnp.broadcast_to(jnp.exp(params["log_std"]), (batch, action_dim))

    if actor_only:
        return mean, std
    return mean, std, values


def init_params(key, input_dim, output_dim, hidden_dim, action_dim):
    """Deterministic synthetic parameter init (uniform(-1/sqrt(fan_in), +))."""

    def linear(k, fan_in, fan_out):
        kw, kb = jax.random.split(k)
        bound = 1.0 / jnp.sqrt(jnp.float32(fan_in))
        w = jax.random.uniform(kw, (fan_in, fan_out), jnp.float32, -bound, bound)
        b = jax.random.uniform(kb, (1, fan_out), jnp.float32, -bound, bound)
        return w, b

    keys = jax.random.split(key, 7)
    w0, b0 = linear(keys[0], input_dim, hidden_dim)
    w1, b1 = linear(keys[1], hidden_dim, hidden_dim)
    w2, b2 = linear(keys[2], hidden_dim, hidden_dim)
    w3, b3 = linear(keys[3], hidden_dim, output_dim)
    wa, ba = linear(keys[4], output_dim, action_dim)
    wc, bc = linear(keys[5], output_dim, 1)
    log_std = -0.5 * jnp.ones((1, action_dim), jnp.float32)
    return dict(
        w0=w0, b0=b0, w1=w1, b1=b1, w2=w2, b2=b2, w3=w3, b3=b3,
        wa=wa, ba=ba, log_std=log_std, wc=wc, bc=bc,
    )


def _reference_forward(x, p, actor_only=True):
    """Pure-JAX f32 reference for correctness checking."""
    y = jnp.maximum(x @ p["w0"] + p["b0"], 0.0)
    y = jnp.maximum(y @ p["w1"] + p["b1"], 0.0)
    y = jnp.maximum(y @ p["w2"] + p["b2"], 0.0)
    latent = y @ p["w3"] + p["b3"]
    mean = latent @ p["wa"] + p["ba"]
    std = jnp.broadcast_to(jnp.exp(p["log_std"]), mean.shape)
    values = latent @ p["wc"] + p["bc"]
    if actor_only:
        return mean, std
    return mean, std, values


if __name__ == "__main__":
    batch = 8
    input_dim = 16
    hidden_dim = 32
    output_dim = 16   # latent_shared dim (the trunk's output_dim)
    action_dim = 8

    key = jax.random.PRNGKey(0)
    k_x, k_p = jax.random.split(key)
    x = jax.random.normal(k_x, (batch, input_dim), jnp.float32)
    params = init_params(k_p, input_dim, output_dim, hidden_dim, action_dim)

    mean, std, values = actor_critic_forward(x, params, actor_only=False)
    jax.block_until_ready((mean, std, values))

    ref_mean, ref_std, ref_values = _reference_forward(x, params, actor_only=False)
    # bf16 MXU matmuls -> loosened tolerance vs. the f32 reference.
    assert jnp.allclose(mean, ref_mean, rtol=5e-2, atol=5e-2), "action_mean mismatch"
    assert jnp.allclose(std, ref_std, rtol=1e-6, atol=1e-6), "action_std mismatch"
    assert jnp.allclose(values, ref_values, rtol=5e-2, atol=5e-2), "values mismatch"

    print("KERNEL_OK")
</pallas_src>

<mosaic_0001>
module attributes {stable_mosaic.version = 11 : i64} {
  func.func @kernel(%arg0: i32, %arg1: memref<16x128xbf16, #tpu.memory_space<vmem>>, %arg2: memref<128x128xbf16, #tpu.memory_space<vmem>>, %arg3: memref<3x128x128xbf16, #tpu.memory_space<vmem>>, %arg4: memref<128x128xbf16, #tpu.memory_space<vmem>>, %arg5: memref<4x128xf32, #tpu.memory_space<vmem>>, %arg6: memref<1x128xf32, #tpu.memory_space<vmem>>, %arg7: memref<16x128xf32, #tpu.memory_space<vmem>>) attributes {dimension_semantics = [#tpu.dimension_semantics<parallel>], iteration_bounds = array<i64: 1>, scalar_prefetch = 0 : i64, scratch_operands = 0 : i64, tpu.core_type = #tpu.core_type<tc>, window_params = [{transform_indices = @transform_0, window_bounds = array<i64: 16, 128>}, {pipeline_mode = #tpu.pipeline_mode<synchronous>, transform_indices = @transform_1, window_bounds = array<i64: 128, 128>}, {pipeline_mode = #tpu.pipeline_mode<synchronous>, transform_indices = @transform_2, window_bounds = array<i64: 3, 128, 128>}, {pipeline_mode = #tpu.pipeline_mode<synchronous>, transform_indices = @transform_3, window_bounds = array<i64: 128, 128>}, {pipeline_mode = #tpu.pipeline_mode<synchronous>, transform_indices = @transform_4, window_bounds = array<i64: 4, 128>}, {pipeline_mode = #tpu.pipeline_mode<synchronous>, transform_indices = @transform_5, window_bounds = array<i64: 1, 128>}, {transform_indices = @transform_6, window_bounds = array<i64: 16, 128>}]} {
    %c0 = arith.constant 0 : index
    %c0_0 = arith.constant 0 : index
    %0 = vector.load %arg1[%c0, %c0_0] : memref<16x128xbf16, #tpu.memory_space<vmem>>, vector<16x128xbf16>
    %c0_1 = arith.constant 0 : index
    %c0_2 = arith.constant 0 : index
    %1 = vector.load %arg2[%c0_1, %c0_2] : memref<128x128xbf16, #tpu.memory_space<vmem>>, vector<128x128xbf16>
    %cst = arith.constant dense<0.000000e+00> : vector<16x128xf32>
    %2 = tpu.matmul %0, %1, %cst {dimension_numbers = #tpu.dot_dimension_numbers<[1], [0], [0], [1], [0, 0, 1, 1], [], []>} : vector<16x128xbf16>, vector<128x128xbf16>, vector<16x128xf32> -> vector<16x128xf32>
    %c0_3 = arith.constant 0 : index
    %c0_4 = arith.constant 0 : index
    %3 = vector.load %arg5[%c0_3, %c0_4] : memref<4x128xf32, #tpu.memory_space<vmem>>, vector<1x128xf32>
    %4 = vector.shape_cast %3 : vector<1x128xf32> to vector<128xf32>
    %5 = vector.shape_cast %4 : vector<128xf32> to vector<1x128xf32>
    %6 = vector.broadcast %5 : vector<1x128xf32> to vector<16x128xf32>
    %7 = arith.addf %2, %6 : vector<16x128xf32>
    %cst_5 = arith.constant 0.000000e+00 : f32
    %8 = vector.broadcast %cst_5 : f32 to vector<16x128xf32>
    %9 = arith.maximumf %7, %8 : vector<16x128xf32>
    %10 = arith.truncf %9 : vector<16x128xf32> to vector<16x128xbf16>
    %c0_6 = arith.constant 0 : index
    %c0_7 = arith.constant 0 : index
    %c0_8 = arith.constant 0 : index
    %11 = vector.load %arg3[%c0_6, %c0_7, %c0_8] : memref<3x128x128xbf16, #tpu.memory_space<vmem>>, vector<1x128x128xbf16>
    %12 = vector.shape_cast %11 : vector<1x128x128xbf16> to vector<128x128xbf16>
    %cst_9 = arith.constant dense<0.000000e+00> : vector<16x128xf32>
    %13 = tpu.matmul %10, %12, %cst_9 {dimension_numbers = #tpu.dot_dimension_numbers<[1], [0], [0], [1], [0, 0, 1, 1], [], []>} : vector<16x128xbf16>, vector<128x128xbf16>, vector<16x128xf32> -> vector<16x128xf32>
    %c1 = arith.constant 1 : index
    %c0_10 = arith.constant 0 : index
    %14 = vector.load %arg5[%c1, %c0_10] : memref<4x128xf32, #tpu.memory_space<vmem>>, vector<1x128xf32>
    %15 = vector.shape_cast %14 : vector<1x128xf32> to vector<128xf32>
    %16 = vector.shape_cast %15 : vector<128xf32> to vector<1x128xf32>
    %17 = vector.broadcast %16 : vector<1x128xf32> to vector<16x128xf32>
    %18 = arith.addf %13, %17 : vector<16x128xf32>
    %cst_11 = arith.constant 0.000000e+00 : f32
    %19 = vector.broadcast %cst_11 : f32 to vector<16x128xf32>
    %20 = arith.maximumf %18, %19 : vector<16x128xf32>
    %21 = arith.truncf %20 : vector<16x128xf32> to vector<16x128xbf16>
    %c1_12 = arith.constant 1 : index
    %c0_13 = arith.constant 0 : index
    %c0_14 = arith.constant 0 : index
    %22 = vector.load %arg3[%c1_12, %c0_13, %c0_14] : memref<3x128x128xbf16, #tpu.memory_space<vmem>>, vector<1x128x128xbf16>
    %23 = vector.shape_cast %22 : vector<1x128x128xbf16> to vector<128x128xbf16>
    %cst_15 = arith.constant dense<0.000000e+00> : vector<16x128xf32>
    %24 = tpu.matmul %21, %23, %cst_15 {dimension_numbers = #tpu.dot_dimension_numbers<[1], [0], [0], [1], [0, 0, 1, 1], [], []>} : vector<16x128xbf16>, vector<128x128xbf16>, vector<16x128xf32> -> vector<16x128xf32>
    %c2 = arith.constant 2 : index
    %c0_16 = arith.constant 0 : index
    %25 = vector.load %arg5[%c2, %c0_16] : memref<4x128xf32, #tpu.memory_space<vmem>>, vector<1x128xf32>
    %26 = vector.shape_cast %25 : vector<1x128xf32> to vector<128xf32>
    %27 = vector.shape_cast %26 : vector<128xf32> to vector<1x128xf32>
    %28 = vector.broadcast %27 : vector<1x128xf32> to vector<16x128xf32>
    %29 = arith.addf %24, %28 : vector<16x128xf32>
    %cst_17 = arith.constant 0.000000e+00 : f32
    %30 = vector.broadcast %cst_17 : f32 to vector<16x128xf32>
    %31 = arith.maximumf %29, %30 : vector<16x128xf32>
    %32 = arith.truncf %31 : vector<16x128xf32> to vector<16x128xbf16>
    %c2_18 = arith.constant 2 : index
    %c0_19 = arith.constant 0 : index
    %c0_20 = arith.constant 0 : index
    %33 = vector.load %arg3[%c2_18, %c0_19, %c0_20] : memref<3x128x128xbf16, #tpu.memory_space<vmem>>, vector<1x128x128xbf16>
    %34 = vector.shape_cast %33 : vector<1x128x128xbf16> to vector<128x128xbf16>
    %cst_21 = arith.constant dense<0.000000e+00> : vector<16x128xf32>
    %35 = tpu.matmul %32, %34, %cst_21 {dimension_numbers = #tpu.dot_dimension_numbers<[1], [0], [0], [1], [0, 0, 1, 1], [], []>} : vector<16x128xbf16>, vector<128x128xbf16>, vector<16x128xf32> -> vector<16x128xf32>
    %c3 = arith.constant 3 : index
    %c0_22 = arith.constant 0 : index
    %36 = vector.load %arg5[%c3, %c0_22] : memref<4x128xf32, #tpu.memory_space<vmem>>, vector<1x128xf32>
    %37 = vector.shape_cast %36 : vector<1x128xf32> to vector<128xf32>
    %38 = vector.shape_cast %37 : vector<128xf32> to vector<1x128xf32>
    %39 = vector.broadcast %38 : vector<1x128xf32> to vector<16x128xf32>
    %40 = arith.addf %35, %39 : vector<16x128xf32>
    %41 = arith.truncf %40 : vector<16x128xf32> to vector<16x128xbf16>
    %c0_23 = arith.constant 0 : index
    %c0_24 = arith.constant 0 : index
    %42 = vector.load %arg4[%c0_23, %c0_24] : memref<128x128xbf16, #tpu.memory_space<vmem>>, vector<128x128xbf16>
    %cst_25 = arith.constant dense<0.000000e+00> : vector<16x128xf32>
    %43 = tpu.matmul %41, %42, %cst_25 {dimension_numbers = #tpu.dot_dimension_numbers<[1], [0], [0], [1], [0, 0, 1, 1], [], []>} : vector<16x128xbf16>, vector<128x128xbf16>, vector<16x128xf32> -> vector<16x128xf32>
    %c0_26 = arith.constant 0 : index
    %c0_27 = arith.constant 0 : index
    %44 = vector.load %arg6[%c0_26, %c0_27] : memref<1x128xf32, #tpu.memory_space<vmem>>, vector<1x128xf32>
    %45 = vector.broadcast %44 : vector<1x128xf32> to vector<16x128xf32>
    %46 = arith.addf %43, %45 : vector<16x128xf32>
    %c0_28 = arith.constant 0 : index
    %c0_29 = arith.constant 0 : index
    %47 = vector.load %arg7[%c0_28, %c0_29] : memref<16x128xf32, #tpu.memory_space<vmem>>, vector<16x128xf32>
    tpu.vector_store %arg7[%c0_28, %c0_29], %46 {strides = array<i32>} : memref<16x128xf32, #tpu.memory_space<vmem>>, vector<16x128xf32>,
    return
  }
  func.func @transform_0(%arg0: i32) -> (i32, i32) {
    %c0_i32 = arith.constant 0 : i32
    %c0_i32_0 = arith.constant 0 : i32
    return %arg0, %c0_i32 : i32, i32
  }
  func.func @transform_1(%arg0: i32) -> (i32, i32) {
    %c0_i32 = arith.constant 0 : i32
    %c0_i32_0 = arith.constant 0 : i32
    %c0_i32_1 = arith.constant 0 : i32
    return %c0_i32, %c0_i32_0 : i32, i32
  }
  func.func @transform_2(%arg0: i32) -> (i32, i32, i32) {
    %c0_i32 = arith.constant 0 : i32
    %c0_i32_0 = arith.constant 0 : i32
    %c0_i32_1 = arith.constant 0 : i32
    %c0_i32_2 = arith.constant 0 : i32
    return %c0_i32, %c0_i32_0, %c0_i32_1 : i32, i32, i32
  }
  func.func @transform_3(%arg0: i32) -> (i32, i32) {
    %c0_i32 = arith.constant 0 : i32
    %c0_i32_0 = arith.constant 0 : i32
    %c0_i32_1 = arith.constant 0 : i32
    return %c0_i32, %c0_i32_0 : i32, i32
  }
  func.func @transform_4(%arg0: i32) -> (i32, i32) {
    %c0_i32 = arith.constant 0 : i32
    %c0_i32_0 = arith.constant 0 : i32
    %c0_i32_1 = arith.constant 0 : i32
    return %c0_i32, %c0_i32_0 : i32, i32
  }
  func.func @transform_5(%arg0: i32) -> (i32, i32) {
    %c0_i32 = arith.constant 0 : i32
    %c0_i32_0 = arith.constant 0 : i32
    %c0_i32_1 = arith.constant 0 : i32
    return %c0_i32, %c0_i32_0 : i32, i32
  }
  func.func @transform_6(%arg0: i32) -> (i32, i32) {
    %c0_i32 = arith.constant 0 : i32
    %c0_i32_0 = arith.constant 0 : i32
    return %arg0, %c0_i32 : i32, i32
  }
}

</mosaic_0001>

<bundles_post_ra>
// kernel: tpu_custom_call.1
= control target key start
LH: loop header
LB: loop body
LE: loop exit
PB: predicated region body
PF: predicated region fallthrough
CT: control target
= control target key end

     0   :  { %11 = vsyncpa [#allocation3], 0  ;;  %s1162_s0 = inlined_call_operand.hbm [shape: bf16[16,128], index: 0, kind: input, shape index: {}]   ;;  %s1163_s1 = inlined_call_operand.hbm [shape: bf16[128,128], index: 1, kind: input, shape index: {}]   ;;  %s1164_s2 = inlined_call_operand.hbm [shape: bf16[3,128,128], index: 2, kind: input, shape index: {}]   ;;  %s1165_s3 = inlined_call_operand.hbm [shape: bf16[128,128], index: 3, kind: input, shape index: {}]   ;;  %s1166_s4 = inlined_call_operand.vmem [shape: f32[4,128], index: 4, kind: input, shape index: {}]   ;;  %s1167_s5 = inlined_call_operand.vmem [shape: f32[1,128], index: 5, kind: input, shape index: {}]   ;;  %s1168_s6 = inlined_call_operand.hbm [shape: f32[16,128], index: 6, kind: output, shape index: {}]  }
   0x1   :  { %12 = vsyncpa [#allocation6], 0 }
   0x2   :  { %13 = vsyncpa [#allocation9], 0 }
   0x3   :  { %14 = vsyncpa [#allocation4], 0  ;;  %s1024_s21 = smov [#allocation5]   ;;  %s1025_s23 = smov [#allocation2]  }
   0x4   :  { %s32_s22 = sshll.u32 %s1024_s21, 4  ;;  %s20_s24 = sshll.u32 %s1025_s23, 4  ;;  %s33_s22 = int_to_ptr.vmem [resolvable:$true] %s32_s22  ;;  %s21_s24 = int_to_ptr.vmem [resolvable:$true] %s20_s24 }
   0x5   :  { %s924_s25 = scalar_lea.vmem %s33_s22, 1024  ;;  %p929_p1 = scmp.lt.s32.totalorder %s33_s22, %s33_s22 }
   0x6   :  { %p925_p0 = scmp.ne.s32.totalorder %s33_s22, %s924_s25  ;;  %p930_p2 = scmp.lt.s32.totalorder %s924_s25, %s924_s25 }
   0x8   :  { %p931_p3 = por %p930_p2, %p929_p1 }
   0xa   :  { %p932_p4 = pnand %p931_p3, %p925_p0 }
   0xc   :  { %935 = shalt.err (!%p932_p4)
}
   0xd   :  { %s1026_s26 = smov 64   ;;  %s1027_s27 = smov 4  }
   0xe   :  { %38 = dma.hbm_to_vmem [thread:$0]  %s1163_s1, 1024, %s33_s22, [#allocation6], %s1026_s26, %s1026_s26, %s1027_s27  }
   0xf   :  { %s944_s30 = scalar_lea.vmem %s21_s24, 128  ;;  %p949_p6 = scmp.lt.s32.totalorder %s21_s24, %s21_s24 }
  0x10   :  { %p945_p5 = scmp.ne.s32.totalorder %s21_s24, %s944_s30  ;;  %p950_p7 = scmp.lt.s32.totalorder %s944_s30, %s944_s30 }
  0x12   :  { %p951_p8 = por %p950_p7, %p949_p6 }
  0x14   :  { %p952_p9 = pnand %p951_p8, %p945_p5 }
  0x16   :  { %955 = shalt.err (!%p952_p9)
}
  0x17   :  { %26 = dma.hbm_to_vmem [thread:$0]  %s1162_s0, 128, %s21_s24, [#allocation3], %s1026_s26, %s1026_s26, %s1027_s27  }
  0x18   :  { %s1028_s9 = smov [#allocation7]   ;;  %s1029_s11 = smov [#allocation8]  }
  0x19   :  { %s44_s10 = sshll.u32 %s1028_s9, 4  ;;  %s56_s12 = sshll.u32 %s1029_s11, 4  ;;  %s45_s10 = int_to_ptr.vmem [resolvable:$true] %s44_s10  ;;  %s57_s12 = int_to_ptr.vmem [resolvable:$true] %s56_s12 }
  0x1a   :  { %s964_s1 = scalar_lea.vmem %s45_s10, 3072  ;;  %p969_p11 = scmp.lt.s32.totalorder %s45_s10, %s45_s10 }
  0x1b   :  { %p965_p10 = scmp.ne.s32.totalorder %s45_s10, %s964_s1  ;;  %p970_p12 = scmp.lt.s32.totalorder %s964_s1, %s964_s1 }
  0x1d   :  { %p971_p13 = por %p970_p12, %p969_p11 }
  0x1f   :  { %p972_p0 = pnand %p971_p13, %p965_p10 }
  0x21   :  { %975 = shalt.err (!%p972_p0)
}
  0x22   :  { %50 = dma.hbm_to_vmem [thread:$0]  %s1164_s2, 3072, %s45_s10, [#allocation6], %s1026_s26, %s1026_s26, %s1027_s27  }
  0x23   :  { %s984_s0 = scalar_lea.vmem %s57_s12, 1024  ;;  %p989_p2 = scmp.lt.s32.totalorder %s57_s12, %s57_s12 }
  0x24   :  { %p985_p1 = scmp.ne.s32.totalorder %s57_s12, %s984_s0  ;;  %p990_p3 = scmp.lt.s32.totalorder %s984_s0, %s984_s0 }
  0x26   :  { %p991_p4 = por %p990_p3, %p989_p2 }
  0x28   :  { %p992_p5 = pnand %p991_p4, %p985_p1 }
  0x2a   :  { %995 = shalt.err (!%p992_p5)
}
  0x2b   :  { %62 = dma.hbm_to_vmem [thread:$0]  %s1165_s3, 1024, %s57_s12, [#allocation9], %s1026_s26, %s1026_s26, %s1027_s27  }
  0x2c   :  { %1016 = dma.done.wait [#allocation3], 128  }
  0x2d   :  { %1017 = vsyncadd [#allocation3], 4294967168 }
  0x2e   :  { %1018 = dma.done.wait [#allocation6], 4096  }
  0x2f   :  { %1019 = vsyncadd [#allocation6], 4294963200 }
  0x30   :  { %1020 = dma.done.wait [#allocation9], 1024  }
  0x31   :  { %1021 = vsyncadd [#allocation9], 4294966272  ;;  %v1030_v0 = vmov 0.0   ;;  %vm1031_vm0 = vmmov 0   ;;  %v875_v1 = vld [vmem:[#allocation5 + $0x38] sm:$0xff]   ;;  %v876_v2 = vld [vmem:[#allocation5 + $0x30] sm:$0xff]  }
  0x32   :  { %764 = vmatprep.subr.bf16.mxu0 %v1030_v0  ;;  %780 = vmatprep.mubr.msk.bf16.mxu0 %vm1031_vm0, %v1030_v0  ;;  %v877_v3 = vld [vmem:[#allocation5 + $0x28] sm:$0xff]   ;;  %v884_v4 = vld [vmem:[#allocation7 + $0x38] sm:$0xff]   ;;  %v878_v5 = vld [vmem:[#allocation5 + $0x20] sm:$0xff]   ;;  %s1032_s25 = smov [#allocation10]  }
  0x33   :  { %784 = vmatprep.subr.bf16.mxu1 %v1030_v0  ;;  %800 = vmatprep.mubr.msk.bf16.mxu1 %vm1031_vm0, %v1030_v0  ;;  %v885_v6 = vld [vmem:[#allocation7 + $0x30] sm:$0xff]   ;;  %v879_v7 = vld [vmem:[#allocation5 + $0x18] sm:$0xff]   ;;  %v886_v8 = vld [vmem:[#allocation7 + $0x28] sm:$0xff]   ;;  %s659_s26 = sshll.u32 %s1032_s25, 4  ;;  %s660_s26 = int_to_ptr.vmem [resolvable:$true] %s659_s26 }
  0x34   :  { %765 = vmatpush3.bf16.msra.mxu0 %v875_v1  ;;  %785 = vmatpush3.bf16.msra.mxu1 %v884_v4  ;;  %v880_v9 = vld [vmem:[#allocation5 + $0x10] sm:$0xff]   ;;  %v887_v10 = vld [vmem:[#allocation7 + $0x20] sm:$0xff]   ;;  %v881_v11 = vld [vmem:[#allocation5 + $0x8] sm:$0xff]   ;;  %p1001_p7 = scmp.lt.s32.totalorder %s660_s26, %s660_s26 }
  0x35   :  { %766 = vmatprep.subr.bf16.mxu0 %v1030_v0  ;;  %786 = vmatprep.subr.bf16.mxu1 %v1030_v0  ;;  %v888_v12 = vld [vmem:[#allocation7 + $0x18] sm:$0xff]   ;;  %v882_v13 = vld [vmem:[#allocation5] sm:$0xff]   ;;  %v889_v15 = vld [vmem:[#allocation7 + $0x10] sm:$0xff]  }
  0x36   :  { %v883_v14 = vld [vmem:[#allocation2] sm:$0xff]   ;;  %v890_v16 = vld [vmem:[#allocation7 + $0x8] sm:$0xff]   ;;  %v891_v17 = vld [vmem:[#allocation7] sm:$0xff]  }
  0x37   :  { %v892_v18 = vld [vmem:[#allocation7 + $0x78] sm:$0xff]   ;;  %v893_v19 = vld [vmem:[#allocation7 + $0x70] sm:$0xff]   ;;  %v894_v20 = vld [vmem:[#allocation7 + $0x68] sm:$0xff]  }
  0x38   :  { %767 = vmatpush3.bf16.msra.mxu0 %v876_v2  ;;  %787 = vmatpush3.bf16.msra.mxu1 %v885_v6  ;;  %v895_v21 = vld [vmem:[#allocation7 + $0x60] sm:$0xff]   ;;  %v896_v22 = vld [vmem:[#allocation7 + $0x58] sm:$0xff]   ;;  %v897_v33 = vld [vmem:[#allocation7 + $0x50] sm:$0xff]  }
  0x39   :  { %768 = vmatprep.subr.bf16.mxu0 %v1030_v0  ;;  %788 = vmatprep.subr.bf16.mxu1 %v1030_v0  ;;  %v673_v23 = vld [vmem:[%s1166_s4] ss:$0 sm:$0xff]  ;;  %v898_v34 = vld [vmem:[#allocation7 + $0x48] sm:$0xff]   ;;  %v899_v35 = vld [vmem:[#allocation7 + $0x40] sm:$0xff]  }
  0x3a   :  { %v900_v36 = vld [vmem:[#allocation7 + $0xb8] sm:$0xff]   ;;  %v901_v37 = vld [vmem:[#allocation7 + $0xb0] sm:$0xff]   ;;  %v902_v38 = vld [vmem:[#allocation7 + $0xa8] sm:$0xff]  }
  0x3b   :  { %v903_v39 = vld [vmem:[#allocation7 + $0xa0] sm:$0xff]   ;;  %v904_v40 = vld [vmem:[#allocation7 + $0x98] sm:$0xff]   ;;  %v905_v51 = vld [vmem:[#allocation7 + $0x90] sm:$0xff]  }
  0x3c   :  { %769 = vmatpush3.bf16.msra.mxu0 %v877_v3  ;;  %789 = vmatpush3.bf16.msra.mxu1 %v886_v8  ;;  %v683_v41 = vld [vmem:[%s1166_s4 + $0x1] ss:$0 sm:$0xff]  ;;  %v906_v52 = vld [vmem:[#allocation7 + $0x88] sm:$0xff]   ;;  %v907_v53 = vld [vmem:[#allocation7 + $0x80] sm:$0xff]  }
  0x3d   :  { %770 = vmatprep.subr.bf16.mxu0 %v1030_v0  ;;  %790 = vmatprep.subr.bf16.mxu1 %v1030_v0  ;;  %v908_v54 = vld [vmem:[#allocation8 + $0x38] sm:$0xff]   ;;  %v909_v55 = vld [vmem:[#allocation8 + $0x30] sm:$0xff]   ;;  %v910_v56 = vld [vmem:[#allocation8 + $0x28] sm:$0xff]  }
  0x3e   :  { %v911_v57 = vld [vmem:[#allocation8 + $0x20] sm:$0xff]   ;;  %v912_v58 = vld [vmem:[#allocation8 + $0x18] sm:$0xff]   ;;  %v913_v59 = vld [vmem:[#allocation8 + $0x10] sm:$0xff]  }
  0x3f   :  { %v692_v60 = vld [vmem:[%s1166_s4 + $0x2] ss:$0 sm:$0xff]  ;;  %v915_v8 = vld [vmem:[#allocation8] sm:$0xff]  }
  0x40   :  { %771 = vmatpush3.bf16.msra.mxu0 %v878_v5  ;;  %791 = vmatpush3.bf16.msra.mxu1 %v887_v10  ;;  %v701_v10 = vld [vmem:[%s1166_s4 + $0x3] ss:$0 sm:$0xff]  ;;  %s996_s4 = scalar_lea.vmem %s660_s26, 256 }
  0x41   :  { %772 = vmatprep.subr.bf16.mxu0 %v1030_v0  ;;  %792 = vmatprep.subr.bf16.mxu1 %v1030_v0  ;;  %p997_p6 = scmp.ne.s32.totalorder %s660_s26, %s996_s4  ;;  %p1002_p8 = scmp.lt.s32.totalorder %s996_s4, %s996_s4 }
  0x43   :  { %p1003_p9 = por %p1002_p8, %p1001_p7 }
  0x44   :  { %773 = vmatpush3.bf16.msra.mxu0 %v879_v7  ;;  %793 = vmatpush3.bf16.msra.mxu1 %v888_v12  ;;  %v914_v7 = vld [vmem:[#allocation8 + $0x8] sm:$0xff]  }
  0x45   :  { %774 = vmatprep.subr.bf16.mxu0 %v1030_v0  ;;  %794 = vmatprep.subr.bf16.mxu1 %v1030_v0  ;;  %p1004_p10 = pnand %p1003_p9, %p997_p6 }
  0x48   :  { %775 = vmatpush3.bf16.msra.mxu0 %v880_v9  ;;  %795 = vmatpush3.bf16.msra.mxu1 %v889_v15 }
  0x49   :  { %776 = vmatprep.subr.bf16.mxu0 %v1030_v0  ;;  %796 = vmatprep.subr.bf16.mxu1 %v1030_v0 }
  0x4c   :  { %777 = vmatpush3.bf16.msra.mxu0 %v881_v11  ;;  %797 = vmatpush3.bf16.msra.mxu1 %v890_v16 }
  0x4d   :  { %778 = vmatprep.subr.bf16.mxu0 %v1030_v0  ;;  %798 = vmatprep.subr.bf16.mxu1 %v1030_v0 }
  0x50   :  { %779 = vmatpush3.bf16.msra.mxu0 %v882_v13  ;;  %799 = vmatpush3.bf16.msra.mxu1 %v891_v17  ;;  %v710_v17 = vld [vmem:[%s1167_s5] ss:$0 sm:$0xff] }
  0x51   :  { %804 = vmatprep.subr.bf16.mxu0 %v1030_v0  ;;  %824 = vmatprep.subr.bf16.mxu1 %v1030_v0 }
  0x53   :  { %781 = vmatmul.mubr.bf16.vlgmr.msra.gmra.mxu0 %v883_v14 }
  0x54   :  { %820 = vmatprep.mubr.msk.bf16.mxu0 %vm1031_vm0, %v1030_v0  ;;  %805 = vmatpush3.bf16.msra.mxu0 %v892_v18 }
  0x55   :  { %806 = vmatprep.subr.bf16.mxu0 %v1030_v0 }
  0x58   :  { %807 = vmatpush3.bf16.msra.mxu0 %v893_v19 }
  0x59   :  { %808 = vmatprep.subr.bf16.mxu0 %v1030_v0 }
  0x5c   :  { %809 = vmatpush3.bf16.msra.mxu0 %v894_v20 }
  0x5d   :  { %810 = vmatprep.subr.bf16.mxu0 %v1030_v0 }
  0x60   :  { %811 = vmatpush3.bf16.msra.mxu0 %v895_v21 }
  0x61   :  { %812 = vmatprep.subr.bf16.mxu0 %v1030_v0 }
  0x64   :  { %813 = vmatpush3.bf16.msra.mxu0 %v896_v22 }
  0x65   :  { %814 = vmatprep.subr.bf16.mxu0 %v1030_v0 }
  0x68   :  { %815 = vmatpush3.bf16.msra.mxu0 %v897_v33 }
  0x69   :  { %816 = vmatprep.subr.bf16.mxu0 %v1030_v0 }
  0x6c   :  { %817 = vmatpush3.bf16.msra.mxu0 %v898_v34 }
  0x6d   :  { %818 = vmatprep.subr.bf16.mxu0 %v1030_v0 }
  0x70   :  { %819 = vmatpush3.bf16.msra.mxu0 %v899_v35 }
  0x71   :  { %844 = vmatprep.subr.bf16.mxu0 %v1030_v0 }
 0x113   :  { %v191_v24 = vpop.f32.mrf.mxu0 }
 0x114   :  { %v192_v26 = vadd.f32 %v673_v23, %v191_v24 }
 0x115   :  { %v782_v25 = vpop.f32.mrf.mxu0 }
 0x116   :  { %v198_v30 = vmax.f32 %v192_v26, 0.0 }
 0x117   :  { %v194_v27 = vpop.f32.mrf.mxu0 }
 0x118   :  { %v195_v28 = vadd.f32 %v673_v23, %v194_v27 }
 0x119   :  { %v783_v29 = vpop.f32.mrf.mxu0 }
 0x11a   :  { %v199_v31 = vmax.f32 %v195_v28, 0.0 }
 0x11c   :  { %v200_v32 = vpack.c.bf16 %v199_v31, %v198_v30 }
 0x11e   :  { %801 = vmatmul.mubr.bf16.vlgmr.msra.gmra.mxu1 %v200_v32 }
 0x11f   :  { %840 = vmatprep.mubr.msk.bf16.mxu1 %vm1031_vm0, %v1030_v0  ;;  %825 = vmatpush3.bf16.msra.mxu1 %v900_v36 }
 0x120   :  { %826 = vmatprep.subr.bf16.mxu1 %v1030_v0 }
 0x123   :  { %827 = vmatpush3.bf16.msra.mxu1 %v901_v37 }
 0x124   :  { %828 = vmatprep.subr.bf16.mxu1 %v1030_v0 }
 0x127   :  { %829 = vmatpush3.bf16.msra.mxu1 %v902_v38 }
 0x128   :  { %830 = vmatprep.subr.bf16.mxu1 %v1030_v0 }
 0x12b   :  { %831 = vmatpush3.bf16.msra.mxu1 %v903_v39 }
 0x12c   :  { %832 = vmatprep.subr.bf16.mxu1 %v1030_v0 }
 0x12f   :  { %833 = vmatpush3.bf16.msra.mxu1 %v904_v40 }
 0x130   :  { %834 = vmatprep.subr.bf16.mxu1 %v1030_v0 }
 0x133   :  { %835 = vmatpush3.bf16.msra.mxu1 %v905_v51 }
 0x134   :  { %836 = vmatprep.subr.bf16.mxu1 %v1030_v0 }
 0x137   :  { %837 = vmatpush3.bf16.msra.mxu1 %v906_v52 }
 0x138   :  { %838 = vmatprep.subr.bf16.mxu1 %v1030_v0 }
 0x13b   :  { %839 = vmatpush3.bf16.msra.mxu1 %v907_v53 }
 0x1de   :  { %v304_v42 = vpop.f32.mrf.mxu1 }
 0x1df   :  { %v305_v44 = vadd.f32 %v683_v41, %v304_v42 }
 0x1e0   :  { %v802_v43 = vpop.f32.mrf.mxu1 }
 0x1e1   :  { %v311_v48 = vmax.f32 %v305_v44, 0.0 }
 0x1e2   :  { %v307_v45 = vpop.f32.mrf.mxu1 }
 0x1e3   :  { %v308_v46 = vadd.f32 %v683_v41, %v307_v45 }
 0x1e4   :  { %v803_v47 = vpop.f32.mrf.mxu1 }
 0x1e5   :  { %v312_v49 = vmax.f32 %v308_v46, 0.0 }
 0x1e7   :  { %v313_v50 = vpack.c.bf16 %v312_v49, %v311_v48 }
 0x1e9   :  { %821 = vmatmul.mubr.bf16.vlgmr.msra.gmra.mxu0 %v313_v50 }
 0x1ea   :  { %860 = vmatprep.mubr.msk.bf16.mxu0 %vm1031_vm0, %v1030_v0  ;;  %845 = vmatpush3.bf16.msra.mxu0 %v908_v54 }
 0x1eb   :  { %846 = vmatprep.subr.bf16.mxu0 %v1030_v0 }
 0x1ee   :  { %847 = vmatpush3.bf16.msra.mxu0 %v909_v55 }
 0x1ef   :  { %848 = vmatprep.subr.bf16.mxu0 %v1030_v0 }
 0x1f2   :  { %849 = vmatpush3.bf16.msra.mxu0 %v910_v56 }
 0x1f3   :  { %850 = vmatprep.subr.bf16.mxu0 %v1030_v0 }
 0x1f6   :  { %851 = vmatpush3.bf16.msra.mxu0 %v911_v57 }
 0x1f7   :  { %852 = vmatprep.subr.bf16.mxu0 %v1030_v0 }
 0x1fa   :  { %853 = vmatpush3.bf16.msra.mxu0 %v912_v58 }
 0x1fb   :  { %854 = vmatprep.subr.bf16.mxu0 %v1030_v0 }
 0x1fe   :  { %855 = vmatpush3.bf16.msra.mxu0 %v913_v59 }
 0x1ff   :  { %856 = vmatprep.subr.bf16.mxu0 %v1030_v0 }
 0x202   :  { %857 = vmatpush3.bf16.msra.mxu0 %v914_v7 }
 0x203   :  { %858 = vmatprep.subr.bf16.mxu0 %v1030_v0 }
 0x206   :  { %859 = vmatpush3.bf16.msra.mxu0 %v915_v8 }
 0x2a9   :  { %v418_v61 = vpop.f32.mrf.mxu0 }
 0x2aa   :  { %v419_v63 = vadd.f32 %v692_v60, %v418_v61 }
 0x2ab   :  { %v822_v62 = vpop.f32.mrf.mxu0 }
 0x2ac   :  { %v425_v4 = vmax.f32 %v419_v63, 0.0 }
 0x2ad   :  { %v421_v1 = vpop.f32.mrf.mxu0 }
 0x2ae   :  { %v422_v2 = vadd.f32 %v692_v60, %v421_v1 }
 0x2af   :  { %v823_v3 = vpop.f32.mrf.mxu0 }
 0x2b0   :  { %v426_v5 = vmax.f32 %v422_v2, 0.0 }
 0x2b2   :  { %v427_v6 = vpack.c.bf16 %v426_v5, %v425_v4 }
 0x2b4   :  { %841 = vmatmul.mubr.bf16.vlgmr.msra.gmra.mxu1 %v427_v6 }
 0x374   :  { %v532_v9 = vpop.f32.mrf.mxu1 }
 0x375   :  { %v533_v13 = vadd.f32 %v701_v10, %v532_v9 }
 0x376   :  { %v842_v11 = vpop.f32.mrf.mxu1 }
 0x378   :  { %v535_v12 = vpop.f32.mrf.mxu1 }
 0x379   :  { %v536_v14 = vadd.f32 %v701_v10, %v535_v12 }
 0x37a   :  { %v843_v15 = vpop.f32.mrf.mxu1 }
 0x37b   :  { %v539_v16 = vpack.c.bf16 %v536_v14, %v533_v13 }
 0x37d   :  { %861 = vmatmul.mubr.bf16.vlgmr.msra.gmra.mxu0 %v539_v16 }
 0x43d   :  { %v645_v18 = vpop.f32.mrf.mxu0 }
 0x43e   :  { %v646_v0 = vadd.f32 %v710_v17, %v645_v18 }
 0x43f   :  { %v862_v19 = vpop.f32.mrf.mxu0 }
 0x440   :  { %652 = vst [vmem:[#allocation10] sm:$0xff] %v646_v0 }
 0x441   :  { %v648_v20 = vpop.f32.mrf.mxu0 }
 0x442   :  { %v649_v21 = vadd.f32 %v710_v17, %v648_v20 }
 0x443   :  { %v863_v22 = vpop.f32.mrf.mxu0 }
 0x444   :  { %653 = vst [vmem:[#allocation10 + $0x8] sm:$0xff] %v649_v21 }
 0x445   :  { %1007 = shalt.err (!%p1004_p10)
}
 0x446   :  { %s1033_s27 = smov 128   ;;  %s1034_s5 = smov 8  }
 0x447   :  { %665 = dma.vmem_to_hbm [thread:$0]  %s660_s26, 256, %s1168_s6, [#allocation4], %s1033_s27, %s1033_s27, %s1034_s5  }
 0x448   :  { %1022 = dma.done.wait [#allocation4], 256  }
 0x449   :  { %1023 = vsyncadd [#allocation4], 4294967040 }
 0x44a   :  { %669 = vsyncpa [#allocation3], 1 }
 0x44b   :  { %670 = vsyncpa [#allocation6], 1 }
 0x44c   :  { %671 = vsyncpa [#allocation9], 1 }
 0x44d   :  { %672 = vsyncpa [#allocation4], 1 }

</bundles_post_ra>
